<compile_context>
chip_gen: v7x
topology: tpu7x:2x2x1
jax: 0.10.0
libtpu: 0.0.40
codegen_flags: <defaults>
</compile_context>

<pallas_src>
import functools

import jax
import jax.numpy as jnp
from jax import lax
from jax.experimental import pallas as pl
from jax.experimental.pallas import tpu as pltpu


_MIB = 1 << 20
_TILE_BUDGET = 24 * _MIB    # per-pass streaming-tile VMEM target for the two-pass path


# --------------------------------------------------------- generation policy ----

@functools.lru_cache(maxsize=None)
def _tpu_vmem_capacity_bytes():
    """Physical per-TensorCore VMEM; conservative v7x value (64 MiB) if unqueryable."""
    try:
        cap = int(pltpu.get_tpu_info().vmem_capacity_bytes)
        if cap > 0:
            return cap
    except Exception:
        pass
    return 64 * _MIB


def _vmem_policy():
    """Returns (ceiling, fused_budget, cores).

    ceiling      - largest vmem_limit_bytes we will request: physical minus headroom for
                   Mosaic internal scratch/semaphores (v7x 64->56 MiB, v5e/v6e 128->112 MiB).
    fused_budget - total double-buffered bytes the fused path may occupy.
    cores        - TensorCores the grid is sharded over (v7x: 2 TCs share one chip).
    """
    physical = _tpu_vmem_capacity_bytes()
    ceiling = physical - max(8 * _MIB, physical // 8)
    fused_budget = int(ceiling * 0.95)
    cores = 2 if physical <= 80 * _MIB else 1   # v7x heuristic: 64 MiB VMEM/TC, 2 TCs/chip
    return ceiling, fused_budget, cores


def _vmem_limit(bytes_needed, ceiling):
    # 25% headroom over the estimate; clamp to [32 MiB, generation ceiling].
    return int(min(ceiling, max(32 * _MIB, int(bytes_needed * 1.25))))


# ------------------------------------------------------------------ kernels ----

def _gate_from_pooled(pooled_f32, w1_ref, b1_ref, w2_ref, b2_ref, *, use_mxu):
    """SE gate: sigmoid(W2 @ relu(W1 @ pooled + b1) + b2), f32 throughout.

    use_mxu routes the two GEMVs onto the MXU (dot_general, f32 accumulation) so large
    C x Csq weights never materialize (Csq,C)/(C,Csq) f32 broadcast intermediates; for
    small C the VPU broadcast+lane-reduce is simpler and just as cheap.
    """
    w1 = w1_ref[...].astype(jnp.float32)      # (Csq, C)
    w2 = w2_ref[...].astype(jnp.float32)      # (C, Csq)
    if use_mxu:
        z = lax.dot_general(pooled_f32, w1, (((1,), (1,)), ((), ())),
                            preferred_element_type=jnp.float32)                  # (1, Csq)
        z = jnp.maximum(z + b1_ref[...], 0.0)                                    # ReLU
        e = lax.dot_general(z, w2, (((1,), (1,)), ((), ())),
                            preferred_element_type=jnp.float32) + b2_ref[...]    # (1, C)
    else:
        z = jnp.sum(pooled_f32[:, None, :] * w1[None, :, :], axis=-1)            # (1, Csq)
        z = jnp.maximum(z + b1_ref[...], 0.0)
        e = jnp.sum(z[:, None, :] * w2[None, :, :], axis=-1) + b2_ref[...]       # (1, C)
    return jax.nn.sigmoid(e)                                                     # (1, C) f32


def _fused_kernel(x_ref, w1_ref, b1_ref, w2_ref, b2_ref, o_ref, *, inv_s, use_mxu):
    # x_ref: (1, C, S). Reduce straight out of the native-dtype tile (f32 accumulation,
    # sum * (1/S)), then scale in the native dtype — no second full-size f32 copy.
    pooled = jnp.sum(x_ref[...], axis=-1, dtype=jnp.float32) * inv_s             # (1, C)
    gate = _gate_from_pooled(pooled, w1_ref, b1_ref, w2_ref, b2_ref, use_mxu=use_mxu)
    # NOTE: gate is downcast to the input dtype before the multiply; for bf16 inputs this
    # differs from "multiply in f32, cast after" by ~2^-8 relative (exact for f32 inputs).
    o_ref[...] = x_ref[...] * gate.astype(o_ref.dtype)[:, :, None]


def _pool_gate_kernel(x_ref, w1_ref, b1_ref, w2_ref, b2_ref, gate_ref, acc_ref,
                      *, inv_s, use_mxu):
    # grid = (N, S // tS); S axis is the reduction ("arbitrary", last).
    s = pl.program_id(1)

    @pl.when(s == 0)
    def _():
        acc_ref[...] = jnp.zeros_like(acc_ref)

    acc_ref[...] += jnp.sum(x_ref[...], axis=-1, dtype=jnp.float32)              # (1, C)

    @pl.when(s == pl.num_programs(1) - 1)
    def _():
        pooled = acc_ref[...] * inv_s
        # Lane-dense (1, C) gate write (C on lanes) instead of a last-dim-1 block, which
        # would lower to masked vst.msk partial stores.
        gate_ref[...] = _gate_from_pooled(pooled, w1_ref, b1_ref, w2_ref, b2_ref,
                                          use_mxu=use_mxu)


def _scale_kernel(x_ref, gate_ref, o_ref):
    # x_ref: (1, tC, tS); gate_ref: (1, tC, 1) f32.  Multiply in the native dtype
    # (bf16 stays packed on v6e/v7x; exact for f32 inputs).
    o_ref[...] = x_ref[...] * gate_ref[...].astype(o_ref.dtype)


# ------------------------------------------------------------- tile planning ----

def _largest_divisor(dim, multiple, max_val):
    """Largest d with dim % d == 0, d % multiple == 0 and d <= max_val (else None)."""
    best = None
    d = multiple
    top = min(dim, max_val)
    while d <= top:
        if dim % d == 0:
            best = d
        d += multiple
    return best


def _sublane_multiple(dtype):
    # Sub-32-bit dtypes pack along sublanes: f32 -> 8, bf16/f16 -> 16, int8/fp8 -> 32.
    return max(8, 32 // jnp.dtype(dtype).itemsize)


def _two_pass_plan(C, S, dtype):
    """Pick (ts_pool, tc, ts_scale, s_work).  s_work > S means the caller must zero-pad
    the flattened spatial axis to s_work so both passes stay lane-dense."""
    itemsize = jnp.dtype(dtype).itemsize
    sub = _sublane_multiple(dtype)
    tc = (_largest_divisor(C, sub, 256) or _largest_divisor(C, 8, 256) or C)

    def lane_tile(s_len, bytes_per_col):
        max_ts = max(128, _TILE_BUDGET // bytes_per_col)
        return _largest_divisor(s_len, 128, max_ts)

    ts_pool = lane_tile(S, 2 * C * itemsize)
    ts_scale = lane_tile(S, 4 * tc * itemsize)
    full_pool_ok = 2 * C * S * itemsize <= _TILE_BUDGET
    full_scale_ok = 4 * tc * S * itemsize <= _TILE_BUDGET
    if (ts_pool or full_pool_ok) and (ts_scale or full_scale_ok):
        return (ts_pool or S), tc, (ts_scale or S), S

    # No multiple-of-128 divisor fits and a full-S block blows the per-pass budget:
    # pad S up to a multiple of 128 so both passes tile lane-dense with a 2-deep pipeline.
    s_pad = -(-S // 128) * 128
    return (lane_tile(s_pad, 2 * C * itemsize) or s_pad), tc, \
           (lane_tile(s_pad, 4 * tc * itemsize) or s_pad), s_pad


# ------------------------------------------------------------------ wrapper ----

def squeeze_expand(x_ncdhw, w1, b1, w2, b2, *, force_two_pass=False, two_pass_tiles=None):
    """x_ncdhw: (N, C, D, H, W); w1: (Csq, C); b1: (Csq,); w2: (C, Csq); b2: (C,).
    (1x1x1 Conv3d weights collapse to dense matrices.)"""
    N, C, D, H, W = x_ncdhw.shape
    S = D * H * W
    Csq = w1.shape[0]
    itemsize = jnp.dtype(x_ncdhw.dtype).itemsize
    p_item = jnp.dtype(w1.dtype).itemsize

    # Lane-dense layout: spatial dims flattened onto the lane axis.
    # (For toy C < 8 the sublane dim pads to 8 — a non-issue for production C >= 64.)
    x = x_ncdhw.reshape(N, C, S)
    b1_2d = b1.reshape(1, Csq)
    b2_2d = b2.reshape(1, C)
    inv_s = float(1.0 / S)
    use_mxu = (C * Csq) >= 128 * 128   # route the gate GEMVs onto the MXU when large

    ceiling, fused_budget, cores = _vmem_policy()

    # Fused-path VMEM accounting: double-buffered x in/out blocks, double-buffered
    # weights/biases, and the f32 broadcast intermediates of the non-MXU gate path.
    # TODO(synk): mark the weight/bias BlockSpecs pipeline_mode=pl.Buffered(1) (constant
    # index_map => double-buffering them is pure VMEM waste) once single-buffer
    # pipeline_mode is verified on this JAX version; until then their double-buffered
    # bytes are simply charged against the budget here.
    param_bytes = 2 * (w1.size + w2.size + b1.size + b2.size) * p_item
    gate_tmp_bytes = 0 if use_mxu else 2 * C * Csq * 4
    fused_bytes = 4 * C * S * itemsize + param_bytes + gate_tmp_bytes

    # v7x megacore: grid=(N,) gives the 2 TensorCores at most N grid points.  For N < cores
    # with a non-trivial slab, the idle core costs more than the two-pass path's 1.5x extra
    # HBM traffic, so prefer the fully-parallel two-pass grids.
    starve_cores = cores > 1 and N < cores and C * S * itemsize > 2 * _MIB

    use_fused = (not force_two_pass) and (not starve_cores) and fused_bytes <= fused_budget

    if use_fused:
        out = pl.pallas_call(
            functools.partial(_fused_kernel, inv_s=inv_s, use_mxu=use_mxu),
            out_shape=jax.ShapeDtypeStruct((N, C, S), x.dtype),
            grid_spec=pltpu.PrefetchScalarGridSpec(
                num_scalar_prefetch=0,
                grid=(N,),
                in_specs=[
                    pl.BlockSpec((1, C, S), lambda n: (n, 0, 0)),
                    pl.BlockSpec((Csq, C), lambda n: (0, 0)),
                    pl.BlockSpec((1, Csq), lambda n: (0, 0)),
                    pl.BlockSpec((C, Csq), lambda n: (0, 0)),
                    pl.BlockSpec((1, C), lambda n: (0, 0)),
                ],
                out_specs=pl.BlockSpec((1, C, S), lambda n: (n, 0, 0)),
            ),
            compiler_params=pltpu.CompilerParams(
                dimension_semantics=("parallel",),
                vmem_limit_bytes=_vmem_limit(fused_bytes, ceiling),
            ),
            cost_estimate=pl.CostEstimate(
                flops=2 * N * C * S,
                transcendentals=N * C,
                bytes_accessed=2 * N * C * S * itemsize,
            ),
        )(x, w1, b1_2d, w2, b2_2d)
        return out.reshape(N, C, D, H, W)

    # ------------------------- two-pass path (large C*S, N starves cores, or forced) ----
    if two_pass_tiles is not None:
        ts_pool, tc, ts_scale = two_pass_tiles
        s_work = S                      # testing hook: caller guarantees divisibility
    else:
        ts_pool, tc, ts_scale, s_work = _two_pass_plan(C, S, x.dtype)

    if s_work != S:
        # Zero-pad the spatial axis: zeros are neutral for the pooled sum (inv_s uses the
        # true S) and the padded tail is sliced off after the scale pass.
        x_work = jnp.pad(x, ((0, 0), (0, 0), (0, s_work - S)))
    else:
        x_work = x

    # Pass 1: tiled global-average pool over S + gate math; lane-dense (N, C) gate output.
    gate = pl.pallas_call(
        functools.partial(_pool_gate_kernel, inv_s=inv_s, use_mxu=use_mxu),
        out_shape=jax.ShapeDtypeStruct((N, C), jnp.float32),
        grid_spec=pltpu.PrefetchScalarGridSpec(
            num_scalar_prefetch=0,
            grid=(N, s_work // ts_pool),
            in_specs=[
                pl.BlockSpec((1, C, ts_pool), lambda n, s: (n, 0, s)),
                pl.BlockSpec((Csq, C), lambda n, s: (0, 0)),
                pl.BlockSpec((1, Csq), lambda n, s: (0, 0)),
                pl.BlockSpec((C, Csq), lambda n, s: (0, 0)),
                pl.BlockSpec((1, C), lambda n, s: (0, 0)),
            ],
            out_specs=pl.BlockSpec((1, C), lambda n, s: (n, 0)),
            scratch_shapes=[pltpu.VMEM((1, C), jnp.float32)],
        ),
        compiler_params=pltpu.CompilerParams(
            dimension_semantics=("parallel", "arbitrary"),
            vmem_limit_bytes=_vmem_limit(
                2 * C * ts_pool * itemsize + param_bytes + gate_tmp_bytes, ceiling),
        ),
        cost_estimate=pl.CostEstimate(
            flops=N * C * s_work,
            transcendentals=N * C,
            bytes_accessed=N * C * s_work * itemsize,
        ),
    )(x_work, w1, b1_2d, w2, b2_2d)

    gate3 = gate.reshape(N, C, 1)   # tiny; layout plumbing for the broadcast in pass 2

    # Pass 2: elementwise scale, fully "parallel" grid (good occupancy on v7x's two TCs).
    out = pl.pallas_call(
        _scale_kernel,
        out_shape=jax.ShapeDtypeStruct((N, C, s_work), x.dtype),
        grid_spec=pltpu.PrefetchScalarGridSpec(
            num_scalar_prefetch=0,
            grid=(N, C // tc, s_work // ts_scale),
            in_specs=[
                pl.BlockSpec((1, tc, ts_scale), lambda n, c, s: (n, c, s)),
                pl.BlockSpec((1, tc, 1), lambda n, c, s: (n, c, 0)),
            ],
            out_specs=pl.BlockSpec((1, tc, ts_scale), lambda n, c, s: (n, c, s)),
        ),
        compiler_params=pltpu.CompilerParams(
            dimension_semantics=("parallel", "parallel", "parallel"),
            vmem_limit_bytes=_vmem_limit(4 * tc * ts_scale * itemsize, ceiling),
        ),
        cost_estimate=pl.CostEstimate(
            flops=N * C * s_work,
            transcendentals=0,
            bytes_accessed=2 * N * C * s_work * itemsize + N * C * 4,
        ),
    )(x_work, gate3)

    if s_work != S:
        out = out[:, :, :S]
    return out.reshape(N, C, D, H, W)


# ---------------------------------------------------------------- reference ----

def _reference(x, w1, b1, w2, b2):
    # pure-JAX reference of the PyTorch forward pass
    pooled = jnp.mean(x.astype(jnp.float32), axis=(2, 3, 4))            # (N, C)
    z = jnp.maximum(pooled @ w1.T + b1, 0.0)                            # (N, Csq)
    e = z @ w2.T + b2                                                   # (N, C)
    gate = jax.nn.sigmoid(e)[:, :, None, None, None]
    return (x.astype(jnp.float32) * gate).astype(x.dtype)


if __name__ == "__main__":
    # small shapes consistent with a 5-D (NCDHW) Conv3d input
    N, C, D, H, W = 2, 4, 8, 8, 8
    se_ratio = 0.5
    Csq = max(1, int(C * se_ratio))  # = 2

    key = jax.random.PRNGKey(0)
    kx, k1, k2, k3, k4 = jax.random.split(key, 5)

    x = jax.random.normal(kx, (N, C, D, H, W), dtype=jnp.float32)
    # deterministic parameter init (Conv3d 1x1x1 weights collapse to dense mats)
    w1 = jax.random.normal(k1, (Csq, C), dtype=jnp.float32) * 0.5   # squeeze conv weight
    b1 = jax.random.normal(k2, (Csq,), dtype=jnp.float32) * 0.1     # squeeze conv bias
    w2 = jax.random.normal(k3, (C, Csq), dtype=jnp.float32) * 0.5   # expand conv weight
    b2 = jax.random.normal(k4, (C,), dtype=jnp.float32) * 0.1       # expand conv bias

    ref = _reference(x, w1, b1, w2, b2)

    # default path (fused for small C*S, unless N would starve a multi-TC chip)
    out_default = jax.block_until_ready(squeeze_expand(x, w1, b1, w2, b2))
    assert out_default.shape == x.shape
    assert jnp.allclose(out_default, ref, atol=1e-5, rtol=1e-5), "default path mismatch"

    # two-pass path (forced with small tiles to exercise the tiled reduction + scale)
    out_2p = jax.block_until_ready(
        squeeze_expand(x, w1, b1, w2, b2, force_two_pass=True,
                       two_pass_tiles=(128, C, 128)))
    assert jnp.allclose(out_2p, ref, atol=1e-5, rtol=1e-5), "two-pass path mismatch"

    print("KERNEL_OK")
</pallas_src>

<mosaic_0001>
module attributes {stable_mosaic.version = 11 : i64} {
  func.func @_fused_kernel(%arg0: i32, %arg1: memref<1x4x512xf32, #tpu.memory_space<vmem>>, %arg2: memref<2x4xf32, #tpu.memory_space<vmem>>, %arg3: memref<1x2xf32, #tpu.memory_space<vmem>>, %arg4: memref<4x2xf32, #tpu.memory_space<vmem>>, %arg5: memref<1x4xf32, #tpu.memory_space<vmem>>, %arg6: memref<1x4x512xf32, #tpu.memory_space<vmem>>) attributes {dimension_semantics = [#tpu.dimension_semantics<parallel>], iteration_bounds = array<i64: 2>, scalar_prefetch = 0 : i64, scratch_operands = 0 : i64, tpu.core_type = #tpu.core_type<tc>, window_params = [{transform_indices = @transform_0, window_bounds = array<i64: 1, 4, 512>}, {pipeline_mode = #tpu.pipeline_mode<synchronous>, transform_indices = @transform_1, window_bounds = array<i64: 2, 4>}, {pipeline_mode = #tpu.pipeline_mode<synchronous>, transform_indices = @transform_2, window_bounds = array<i64: 1, 2>}, {pipeline_mode = #tpu.pipeline_mode<synchronous>, transform_indices = @transform_3, window_bounds = array<i64: 4, 2>}, {pipeline_mode = #tpu.pipeline_mode<synchronous>, transform_indices = @transform_4, window_bounds = array<i64: 1, 4>}, {transform_indices = @transform_5, window_bounds = array<i64: 1, 4, 512>}]} {
    %c0 = arith.constant 0 : index
    %c0_0 = arith.constant 0 : index
    %c0_1 = arith.constant 0 : index
    %0 = vector.load %arg1[%c0, %c0_0, %c0_1] : memref<1x4x512xf32, #tpu.memory_space<vmem>>, vector<1x4x512xf32>
    %cst = arith.constant dense<0.000000e+00> : vector<1x4xf32>
    %1 = vector.multi_reduction <add>, %0, %cst [2] : vector<1x4x512xf32> to vector<1x4xf32>
    %cst_2 = arith.constant 0.001953125 : f32
    %2 = vector.broadcast %cst_2 : f32 to vector<1x4xf32>
    %3 = arith.mulf %1, %2 : vector<1x4xf32>
    %c0_3 = arith.constant 0 : index
    %c0_4 = arith.constant 0 : index
    %4 = vector.load %arg2[%c0_3, %c0_4] : memref<2x4xf32, #tpu.memory_space<vmem>>, vector<2x4xf32>
    %c0_5 = arith.constant 0 : index
    %c0_6 = arith.constant 0 : index
    %5 = vector.load %arg4[%c0_5, %c0_6] : memref<4x2xf32, #tpu.memory_space<vmem>>, vector<4x2xf32>
    %6 = vector.shape_cast %3 : vector<1x4xf32> to vector<1x1x4xf32>
    %7 = vector.shape_cast %4 : vector<2x4xf32> to vector<1x2x4xf32>
    %8 = vector.broadcast %6 : vector<1x1x4xf32> to vector<1x2x4xf32>
    %9 = arith.mulf %8, %7 : vector<1x2x4xf32>
    %cst_7 = arith.constant dense<0.000000e+00> : vector<1x2xf32>
    %10 = vector.multi_reduction <add>, %9, %cst_7 [2] : vector<1x2x4xf32> to vector<1x2xf32>
    %c0_8 = arith.constant 0 : index
    %c0_9 = arith.constant 0 : index
    %11 = vector.load %arg3[%c0_8, %c0_9] : memref<1x2xf32, #tpu.memory_space<vmem>>, vector<1x2xf32>
    %12 = arith.addf %10, %11 : vector<1x2xf32>
    %cst_10 = arith.constant 0.000000e+00 : f32
    %13 = vector.broadcast %cst_10 : f32 to vector<1x2xf32>
    %14 = arith.maximumf %12, %13 : vector<1x2xf32>
    %15 = vector.shape_cast %14 : vector<1x2xf32> to vector<1x1x2xf32>
    %16 = vector.shape_cast %5 : vector<4x2xf32> to vector<1x4x2xf32>
    %17 = vector.broadcast %15 : vector<1x1x2xf32> to vector<1x4x2xf32>
    %18 = arith.mulf %17, %16 : vector<1x4x2xf32>
    %cst_11 = arith.constant dense<0.000000e+00> : vector<1x4xf32>
    %19 = vector.multi_reduction <add>, %18, %cst_11 [2] : vector<1x4x2xf32> to vector<1x4xf32>
    %c0_12 = arith.constant 0 : index
    %c0_13 = arith.constant 0 : index
    %20 = vector.load %arg5[%c0_12, %c0_13] : memref<1x4xf32, #tpu.memory_space<vmem>>, vector<1x4xf32>
    %21 = arith.addf %19, %20 : vector<1x4xf32>
    %22 = arith.negf %21 : vector<1x4xf32>
    %23 = math.exp %22 : vector<1x4xf32>
    %cst_14 = arith.constant 1.000000e+00 : f32
    %24 = vector.broadcast %cst_14 : f32 to vector<1x4xf32>
    %25 = arith.addf %24, %23 : vector<1x4xf32>
    %26 = arith.divf %24, %25 : vector<1x4xf32>
    %c0_15 = arith.constant 0 : index
    %c0_16 = arith.constant 0 : index
    %c0_17 = arith.constant 0 : index
    %27 = vector.load %arg1[%c0_15, %c0_16, %c0_17] : memref<1x4x512xf32, #tpu.memory_space<vmem>>, vector<1x4x512xf32>
    %28 = vector.shape_cast %26 : vector<1x4xf32> to vector<1x4x1xf32>
    %29 = vector.broadcast %28 : vector<1x4x1xf32> to vector<1x4x512xf32>
    %30 = arith.mulf %27, %29 : vector<1x4x512xf32>
    %c0_18 = arith.constant 0 : index
    %c0_19 = arith.constant 0 : index
    %c0_20 = arith.constant 0 : index
    %31 = vector.load %arg6[%c0_18, %c0_19, %c0_20] : memref<1x4x512xf32, #tpu.memory_space<vmem>>, vector<1x4x512xf32>
    tpu.vector_store %arg6[%c0_18, %c0_19, %c0_20], %30 {strides = array<i32>} : memref<1x4x512xf32, #tpu.memory_space<vmem>>, vector<1x4x512xf32>,
    return
  }
  func.func @transform_0(%arg0: i32) -> (i32, i32, i32) {
    %c0_i32 = arith.constant 0 : i32
    %c0_i32_0 = arith.constant 0 : i32
    %c0_i32_1 = arith.constant 0 : i32
    return %arg0, %c0_i32, %c0_i32_0 : i32, i32, i32
  }
  func.func @transform_1(%arg0: i32) -> (i32, i32) {
    %c0_i32 = arith.constant 0 : i32
    %c0_i32_0 = arith.constant 0 : i32
    %c0_i32_1 = arith.constant 0 : i32
    return %c0_i32, %c0_i32_0 : i32, i32
  }
  func.func @transform_2(%arg0: i32) -> (i32, i32) {
    %c0_i32 = arith.constant 0 : i32
    %c0_i32_0 = arith.constant 0 : i32
    %c0_i32_1 = arith.constant 0 : i32
    return %c0_i32, %c0_i32_0 : i32, i32
  }
  func.func @transform_3(%arg0: i32) -> (i32, i32) {
    %c0_i32 = arith.constant 0 : i32
    %c0_i32_0 = arith.constant 0 : i32
    %c0_i32_1 = arith.constant 0 : i32
    return %c0_i32, %c0_i32_0 : i32, i32
  }
  func.func @transform_4(%arg0: i32) -> (i32, i32) {
    %c0_i32 = arith.constant 0 : i32
    %c0_i32_0 = arith.constant 0 : i32
    %c0_i32_1 = arith.constant 0 : i32
    return %c0_i32, %c0_i32_0 : i32, i32
  }
  func.func @transform_5(%arg0: i32) -> (i32, i32, i32) {
    %c0_i32 = arith.constant 0 : i32
    %c0_i32_0 = arith.constant 0 : i32
    %c0_i32_1 = arith.constant 0 : i32
    return %arg0, %c0_i32, %c0_i32_0 : i32, i32, i32
  }
}

</mosaic_0001>

<bundles_post_ra>
// kernel: tpu_custom_call.1
= control target key start
LH: loop header
LB: loop body
LE: loop exit
PB: predicated region body
PF: predicated region fallthrough
CT: control target
= control target key end

     0   :  { %10 = vsyncpa [#allocation3], 0  ;;  %s921_s0 = inlined_call_operand.hbm [shape: f32[2,4,512], index: 0, kind: input, shape index: {}]   ;;  %s922_s1 = inlined_call_operand.vmem [shape: f32[2,4], index: 1, kind: input, shape index: {}]   ;;  %s923_s2 = inlined_call_operand.vmem [shape: f32[1,2], index: 2, kind: input, shape index: {}]   ;;  %s924_s3 = inlined_call_operand.vmem [shape: f32[4,2], index: 3, kind: input, shape index: {}]   ;;  %s925_s4 = inlined_call_operand.vmem [shape: f32[1,4], index: 4, kind: input, shape index: {}]   ;;  %s926_s5 = inlined_call_operand.hbm [shape: f32[2,4,512], index: 5, kind: output, shape index: {}]  }
   0x1   :  { %12 = vsyncpa [#allocation3 + $0x1], 0 }
   0x2   :  { %13 = vsyncpa [#allocation4], 0 }
   0x3   :  { %15 = vsyncpa [#allocation4 + $0x1], 0  ;;  %s722_s18 = smov 0   ;;  %s724_s19 = smov 0  }
   0x4   :  { %s726_s20 = smov 0   ;;  %s728_s21 = smov 0  }
   0x5 LB: > { %s743_s22 = sadd.s32 4294967295, %s686_s21   ;;  %s515_s23 = sadd.s32 4294967294, %s686_s21   ;;  %s686_s21 = sphi %s728_s21, %s941_s21   ;;  %s682_s20 = sphi %s726_s20, %s940_s20   ;;  %s678_s19 = sphi %s724_s19, %s939_s19   ;;  %s674_s18 = sphi %s722_s18, %s938_s18  }
   0x6   : > { %s747_s24 = sadd.s32 1, %s686_s21   ;;  %s28_s25 = sadd.s32 1, %s682_s20 }
   0x7   : > { %s25_s26 = ssub.s32 %s686_s21, %s747_s24  ;;  %p35_p0 = scmp.ne.s32.totalorder %s682_s20, %s678_s19 }
   0x8   : > { %p26_p1 = scmp.eq.s32.totalorder %s25_s26, 0  ;;  %p36_p2 = scmp.eq.s32.totalorder %s686_s21, 0 }
   0x9   : > { %p41_p3 = scmp.ne.s32.totalorder %s678_s19, %s674_s18  ;;  %p42_p4 = scmp.eq.s32.totalorder %s743_s22, 0 }
   0xa   : > { %s759_s27 = scalar_select %p26_p1, %s682_s20, %s28_s25  }
   0xb   : > { %p761_p5 = por %p36_p2, %p35_p0  ;;  %p765_p6 = por %p42_p4, %p41_p3 }
   0xc   : > { %p149_p7 = scmp.eq.s32.totalorder %s743_s22, 1  ;;  %p155_p8 = scmp.eq.s32.totalorder %s515_s23, 1 }
   0xd   : > { %p546_p10 = scmp.lt.s32.totalorder %s686_s21, 2  ;;  %s187_s7 = sand.u32 1, %s682_s20  }
   0xe   : > { %p772_p11 = por %p149_p7, %p35_p0  ;;  %p776_p12 = por %p155_p8, %p41_p3 }
   0xf   : > { %s532_s8 = sshll.u32 %s686_s21, 8  ;;  %s518_s9 = sshll.u32 %s187_s7, 4 }
  0x10   : > { %s930_s30 = scalar_select %p772_p11, 1, 0 }
  0x11   : > { %s931_s6 = scalar_select %p776_p12, 1, 0 }
  0x12   : > { %s785_s12 = scalar_lea.hbm %s921_s0, %s532_s8  ;;  %s191_s13 = scalar_lea.vmem [#allocation2], %s518_s9 }
  0x13   : > { %s199_s14 = sshll.u32 %s191_s13, 4  ;;  %p789_p13 = pnand %p546_p10, %p761_p5  ;;  %s793_s14 = int_to_ptr.vmem [resolvable:$true] %s199_s14 }
  0x14   : > { %s188_s16 = scalar_lea.sflag [#allocation3], %s187_s7  ;;  %s590_s17 = scalar_lea.hbm %s785_s12, 256 }
  0x15   : > { %p591_p2 = scmp.ne.s32.totalorder %s785_s12, %s590_s17  ;;  %p592_p3 = pneg %p789_p13 }
  0x16   : > { %s595_s26 = scalar_lea.hbm %s921_s0, 512  ;;  %p596_p5 = scmp.lt.u32.totalorder %s785_s12, %s921_s0 }
  0x17   : > { %p593_p4 = pnand %p592_p3, %p591_p2  ;;  %p597_p8 = scmp.lt.u32.totalorder %s595_s26, %s590_s17 }
  0x18   : > { %p599_p9 = scmp.lt.u32.totalorder %s590_s17, %s785_s12 }
  0x19   : > { %p594_p7 = pneg %p593_p4  ;;  %p598_p10 = por %p597_p8, %p596_p5 }
  0x1b   : > { %p600_p0 = por %p599_p9, %p598_p10 }
  0x1d   : > { %p601_p1 = pnand %p600_p0, %p594_p7 }
  0x1f   : > { %604 = shalt.err (!%p601_p1)
}
  0x20   : > { %s605_s7 = scalar_lea.vmem %s793_s14, 256  ;;  %s688_s9 = smov [#allocation2]  }
  0x21   : > { %p606_p2 = scmp.ne.s32.totalorder %s793_s14, %s605_s7  ;;  %s610_s10 = sshll.u32 %s688_s9, 4  ;;  %s611_s10 = int_to_ptr.vmem [resolvable:$false] %s610_s10 }
  0x22   : > { %s612_s11 = scalar_lea.vmem %s611_s10, 512  ;;  %p613_p11 = scmp.lt.s32.totalorder %s793_s14, %s611_s10 }
  0x23   : > { %p608_p4 = pnand %p606_p2, %p592_p3  ;;  %p614_p5 = scmp.lt.s32.totalorder %s612_s11, %s605_s7 }
  0x25   : > { %p609_p12 = pneg %p608_p4  ;;  %p615_p8 = por %p614_p5, %p613_p11 }
  0x27   : > { %p616_p9 = pnand %p615_p8, %p609_p12 }
  0x29   : > { %619 = shalt.err (!%p616_p9)
}
  0x2a   : > { %541 = dma.hbm_to_vmem [thread:$0]  (!%p789_p13), %s785_s12, 256, %s793_s14, %s188_s16  }
  0x2b   : > { %p933_p0 = scmp.lt.s32.totalorder %s686_s21, 3  ;;  %p934_p1 = scmp.ge.s32.totalorder %s686_s21, 1 }
  0x2d   : > { %p205_p3 = pnand %p934_p1, %p933_p0 }
  0x2e   : > { %s827_s13 = sand.u32 (!%p205_p3), 1, %s678_s19  }
  0x2f   : > { %208 = sbr.rel (%p205_p3) target bundleno = 953 (0x3b9), region = 40  ;;  %s522_s17 = sshll.u32 (!%p205_p3), %s827_s13, 4 }
  0x30   : > { %s211_s23 = scalar_lea.sflag (!%p205_p3), [#allocation3], %s827_s13  ;;  %s214_s15 = scalar_lea.vmem (!%p205_p3), [#allocation2], %s522_s17 }
  0x36   : > { %665 = dma.done.wait (%p765_p6), %s211_s23, 256  }
  0x37   : > { %667 = vsyncadd (%p765_p6), %s211_s23, 4294967040  ;;  %v263_v0 = vlaneseq  ;;  %vm249_vm0 = vcmask 1043456   ;;  %v840_v3 = vld [vmem:[%s214_s15] sm:$0xff]  ;;  %v842_v4 = vld [vmem:[%s214_s15 + $0x8] sm:$0xff]  ;;  %v689_v18 = vmov 0   ;;  %vm299_vm1 = vcmask 1041409  }
  0x38   : > { %v260_v5 = vld [vmem:[%s922_s1] sm:$0x3]  ;;  %v245_v6 = vcombine.high %v840_v3, %v840_v3  ;;  %v246_v7 = vcombine.high %v842_v4, %v842_v4  ;;  %v250_v8 = vsel %vm249_vm0, %v840_v3, 0.0  ;;  %v253_v11 = vsel %vm249_vm0, %v842_v4, 0.0  ;;  %582 = vset.pattern.permute.xlu1 %v689_v18  ;;  %583 = vset.pattern.permute.xlu0 %v689_v18  ;;  %s533_s7 = sshll.u32 %s743_s22, 8  ;;  %s240_s9 = scalar_lea.vmem [#allocation5], %s522_s17 }
  0x39   : > { %v837_v1 = vshrl.u32 %v263_v0, 7  ;;  %v524_v25 = vld [vmem:[%s923_s2] ss:$0 sm:$0xff]  ;;  %v290_v33 = vand.u32 127, %v263_v0  ;;  %vm302_vm2 = vcmask 25600   ;;  %vm388_vm3 = vcmask 1042434   ;;  %s877_s15 = scalar_lea.hbm %s926_s5, %s533_s7 }
  0x3a   : > { %v251_v10 = vsel %vm249_vm0, %v245_v6, 0.0  ;;  %v255_v13 = vsel %vm249_vm0, %v246_v7, 0.0  ;;  %v261_v26 = vld [vmem:[%s924_s3] sm:$0xf]  ;;  %vm390_vm4 = vcmask 1043459   ;;  %vm393_vm5 = vcmask 11264  }
  0x3b   : > { %v272_v2 = vsub.s32 1, %v837_v1  ;;  %v252_v12 = vadd.f32 %v251_v10, %v250_v8  ;;  %v265_v16 = vsub.s32 0, %v837_v1  ;;  %v335_v29 = vsub.s32 2, %v837_v1  ;;  %v525_v53 = vld [vmem:[%s925_s4] ss:$0 sm:$0xff]  ;;  %s445_s10 = sshll.u32 %s240_s9, 4  ;;  %s879_s10 = int_to_ptr.vmem [resolvable:$true] %s445_s10 }
  0x3c   : > { %v342_v31 = vsub.s32 3, %v837_v1  ;;  %v293_v35 = vsub.s32 %v290_v33, %v837_v1  ;;  %s431_s22 = scalar_lea.sflag [#allocation4], %s827_s13  ;;  %s620_s17 = scalar_lea.vmem %s879_s10, 256 }
  0x3d   : > { %v273_v9 = vrot.slane %v260_v5, %v272_v2  ;;  %v254_v14 = vadd.f32 %v253_v11, %v252_v12  ;;  %v266_v17 = vrot.slane %v260_v5, %v265_v16  ;;  %v322_v27 = vrot.slane %v261_v26, %v265_v16  ;;  %p621_p6 = scmp.ne.s32.totalorder %s879_s10, %s620_s17  ;;  %p935_p11 = scmp.ne.s32.totalorder %s930_s30, 0 }
  0x3e   : > { %v329_v28 = vrot.slane %v261_v26, %v272_v2  ;;  %v336_v30 = vrot.slane %v261_v26, %v335_v29  ;;  %v343_v32 = vrot.slane %v261_v26, %v342_v31  ;;  %v690_v12 = vmov 839922192   ;;  %s691_s12 = smov [#allocation5]  }
  0x3f   : > { %275 = vbcast.lane.b32.xlu1 %v273_v9, 256  ;;  %v256_v15 = vadd.f32 %v255_v13, %v254_v14  ;;  %v419_v13 = vunpack.c.l.s4 %v690_v12  ;;  %p622_p12 = pnand %p621_p6, %p935_p11  ;;  %s624_s14 = sshll.u32 %s691_s12, 4  ;;  %s625_s14 = int_to_ptr.vmem [resolvable:$false] %s624_s14 }
  0x40   : > { %s626_s29 = scalar_lea.vmem %s625_s14, 512  ;;  %p627_p7 = scmp.lt.s32.totalorder %s879_s10, %s625_s14 }
  0x41   : > { %257 = vadd.xlane.f32.xlu0 %v256_v15  ;;  %v420_v14 = vunpack.c.0.s8 %v419_v13  ;;  %p623_p13 = pneg %p622_p12  ;;  %p628_p10 = scmp.lt.s32.totalorder %s626_s29, %s620_s17 }
  0x43   : > { %v423_v15 = vsub.s32 %v420_v14, %v837_v1  ;;  %p629_p2 = por %p628_p10, %p627_p7 }
  0x45   : > { %p630_p4 = pnand %p629_p2, %p623_p13 }
  0x57   : > { %268 = vbcast.lane.b32.xlu0 %v266_v17, 256 }
  0x5b   : > { %313 = vbcast.lane.b32.xlu0 %v524_v25, 256 }
  0x5f   : > { %324 = vbcast.lane.b32.xlu0 %v322_v27, 256 }
  0x63   : > { %331 = vbcast.lane.b32.xlu0 %v329_v28, 256 }
  0x67   : > { %338 = vbcast.lane.b32.xlu0 %v336_v30, 256 }
  0x6b   : > { %345 = vbcast.lane.b32.xlu0 %v343_v32, 256 }
  0xb1   : > { %v276_v23 = vpop.permute.xlu1 %275 }
  0xce   : > { %v258_v19 = vpop.xlane.xlu0 %257 }
  0xcf   : > { %v259_v20 = vmul.f32 0.001953125, %v258_v19 }
  0xd1   : > { %v280_v24 = vmul.f32 %v276_v23, %v259_v20 }
  0xd2   : > { %v269_v21 = vpop.permute.xlu0 %268 }
  0xd3   : > { %v279_v22 = vmul.f32 %v269_v21, %v259_v20 }
  0xd5   : > { %284 = vperm.xlu1 %582, %v279_v22  }
  0xd6   : > { %v314_v41 = vpop.permute.xlu0 %313 }
  0xd9   : > { %287 = vperm.xlu1 %582, %v280_v24  }
  0xda   : > { %v325_v42 = vpop.permute.xlu0 %324 }
  0xde   : > { %v332_v43 = vpop.permute.xlu0 %331 }
  0xe2   : > { %v339_v47 = vpop.permute.xlu0 %338 }
  0xe6   : > { %v346_v51 = vpop.permute.xlu0 %345 }
 0x154   : > { %v285_v34 = vpop.permute.xlu1 %284 }
 0x155   : > { %v294_v37 = vrot.slane %v285_v34, %v293_v35 }
 0x158   : > { %v288_v36 = vpop.permute.xlu1 %287 }
 0x159   : > { %v298_v38 = vrot.slane %v288_v36, %v293_v35 }
 0x15b   : > { %v300_v39 = vsel %vm299_vm1, %v298_v38, %v294_v37 }
 0x15c   : > { %v303_v40 = vsel %vm302_vm2, %v300_v39, 0.0 }
 0x15d   : > { %304 = vadd.xlane.f32.xlu1 %v303_v40 }
 0x1ea   : > { %v305_v44 = vpop.xlane.xlu1 %304 }
 0x1eb   : > { %v316_v45 = vadd.f32 %v314_v41, %v305_v44 }
 0x1ed   : > { %v317_v46 = vmax.f32 %v316_v45, 0.0 }
 0x1ef   : > { %v351_v48 = vmul.f32 %v325_v42, %v317_v46  ;;  %v352_v49 = vmul.f32 %v332_v43, %v317_v46  ;;  %v353_v50 = vmul.f32 %v339_v47, %v317_v46  ;;  %v354_v52 = vmul.f32 %v346_v51, %v317_v46 }
 0x1f1   : > { %360 = vperm.xlu0 %583, %v351_v48   ;;  %363 = vperm.xlu1 %582, %v352_v49  }
 0x1f5   : > { %366 = vperm.xlu0 %583, %v353_v50   ;;  %404 = vbcast.lane.b32.xlu1 %v525_v53, 256 }
 0x1f9   : > { %369 = vperm.xlu0 %583, %v354_v52  }
 0x270   : > { %v361_v54 = vpop.permute.xlu0 %360  ;;  %v364_v55 = vpop.permute.xlu1 %363 }
 0x271   : > { %v378_v57 = vrot.slane %v364_v55, %v293_v35  ;;  %v374_v58 = vrot.slane %v361_v54, %v293_v35 }
 0x273   : > { %v387_v61 = vsel %vm299_vm1, %v378_v57, %v374_v58 }
 0x274   : > { %v367_v56 = vpop.permute.xlu0 %366  ;;  %v405_v5 = vpop.permute.xlu1 %404 }
 0x275   : > { %v382_v59 = vrot.slane %v367_v56, %v293_v35 }
 0x277   : > { %v389_v63 = vsel %vm388_vm3, %v382_v59, %v387_v61 }
 0x278   : > { %v370_v60 = vpop.permute.xlu0 %369 }
 0x279   : > { %v386_v62 = vrot.slane %v370_v60, %v293_v35 }
 0x27b   : > { %v391_v0 = vsel %vm390_vm4, %v386_v62, %v389_v63 }
 0x27c   : > { %v394_v2 = vsel %vm393_vm5, %v391_v0, 0.0 }
 0x27d   : > { %395 = vadd.xlane.f32.xlu0 %v394_v2 }
 0x30a   : > { %v396_v6 = vpop.xlane.xlu0 %395 }
 0x30b   : > { %v407_v7 = vadd.f32 %v405_v5, %v396_v6 }
 0x30d   : > { %v526_v8 = vmul.f32 -1.442695, %v407_v7 }
 0x30f   : > { %586 = vpow2.f32 %v526_v8 }
 0x319   : > { %v587_v9 = vpop.eup %586 }
 0x31a   : > { %v411_v10 = vadd.f32 1.0, %v587_v9 }
 0x31c   : > { %588 = vrcp.f32 %v411_v10 }
 0x326   : > { %v589_v11 = vpop.eup %588 }
 0x327   : > { %416 = vperm.xlu1 %582, %v589_v11  }
 0x3a6   : > { %v417_v16 = vpop.permute.xlu1 %416 }
 0x3a7   : > { %v424_v17 = vrot.slane %v417_v16, %v423_v15 }
 0x3a9   : > { %v426_v18 = vmul.f32 %v424_v17, %v840_v3  ;;  %v427_v19 = vmul.f32 %v424_v17, %v842_v4 }
 0x3ab   : > { %428 = vst [vmem:[%s240_s9] sm:$0xff] %v426_v18  ;;  %429 = vst [vmem:[%s240_s9 + $0x8] sm:$0xff] %v427_v19 }
 0x3ac   : > { %633 = shalt.err (!%p630_p4)
}
 0x3ad   : > { %s634_s13 = scalar_lea.hbm %s877_s15, 256  ;;  %s638_s26 = scalar_lea.hbm %s926_s5, 512 }
 0x3ae   : > { %p635_p5 = scmp.ne.s32.totalorder %s877_s15, %s634_s13  ;;  %p639_p0 = scmp.lt.u32.totalorder %s877_s15, %s926_s5 }
 0x3af   : > { %p640_p1 = scmp.lt.u32.totalorder %s638_s26, %s634_s13  ;;  %p642_p6 = scmp.lt.u32.totalorder %s634_s13, %s877_s15 }
 0x3b0   : > { %p636_p8 = pnand %p635_p5, %p935_p11 }
 0x3b1   : > { %p641_p3 = por %p640_p1, %p639_p0 }
 0x3b2   : > { %p637_p9 = pneg %p636_p8 }
 0x3b3   : > { %p643_p12 = por %p642_p6, %p641_p3 }
 0x3b5   : > { %p644_p13 = pnand %p643_p12, %p637_p9 }
 0x3b7   : > { %647 = shalt.err (!%p644_p13)
}
 0x3b8   : > { %536 = dma.vmem_to_hbm [thread:$0]  (%p935_p11), %s879_s10, 256, %s877_s15, %s431_s22  }
 0x3b9 PF: > { %s457_s7 = sand.u32 1, %s674_s18   ;;  %p936_p7 = scmp.ne.s32.totalorder %s931_s6, 0 }
 0x3ba   : > { %p937_p10 = scmp.ge.s32.totalorder %s686_s21, 2  ;;  %s458_s9 = scalar_lea.sflag [#allocation4], %s457_s7 }
 0x3bc   : > { %p543_p2 = pnand %p937_p10, %p936_p7 }
 0x3be   : > { %669 = dma.done.wait (!%p543_p2), %s458_s9, 256  }
 0x3bf   : > { %671 = vsyncadd (!%p543_p2), %s458_s9, 4294967040  ;;  %p18_p4 = scmp.ge.s32.totalorder %s747_s24, 4   ;;  %s938_s18 = smov %s678_s19 }
 0x3c0   : > { %s939_s19 = smov %s682_s20  ;;  %s940_s20 = smov %s759_s27 }
 0x3c1   : > { %s941_s21 = smov %s747_s24  ;;  %20 = sbr.rel (!%p18_p4) target bundleno = 5 (0x5), region = 85 }
 0x3c8   :  { %463 = vsyncpa [#allocation3], 1 }
 0x3c9   :  { %465 = vsyncpa [#allocation3 + $0x1], 1 }
 0x3ca   :  { %466 = vsyncpa [#allocation4], 1 }
 0x3cb   :  { %468 = vsyncpa [#allocation4 + $0x1], 1 }

</bundles_post_ra>
